<compile_context>
chip_gen: v7x
topology: tpu7x:2x2x1
jax: 0.10.0
libtpu: 0.0.40
codegen_flags: <defaults>
</compile_context>

<pallas_src>
import functools
import math

import jax
import jax.numpy as jnp
from jax.experimental import pallas as pl
from jax.experimental.pallas import tpu as pltpu


def _permute_matmul_kernel(x_ref, q_ref, o_ref):
    # One (tm, D) row tile of X times one (D, tn) column tile of Q on the MXU.
    q = q_ref[...].astype(x_ref.dtype)
    o_ref[...] = jnp.dot(
        x_ref[...], q, preferred_element_type=jnp.float32
    ).astype(o_ref.dtype)


def _round_up(n, m):
    return ((n + m - 1) // m) * m


def _choose_row_tile(M, tm_max):
    """Big (multiple-of-256) row tiles for large M, a single padded block otherwise."""
    if M <= 256:
        # Single block; 32-row multiple is layout-safe for f32 / bf16 / int8 inputs.
        return _round_up(max(M, 8), 32)
    # Keep >= ~4 grid steps so both v7x TensorCores get work under "parallel"
    # semantics, while still using MXU-sized (multiple-of-256) row tiles.
    return max(256, min(tm_max, _round_up(pl.cdiv(M, 4), 256)))


@functools.partial(jax.jit, static_argnames=("tm", "tn"))
def random_permute_forward(x, q, *, tm=512, tn=512):
    """Computes x @ q for x of shape (..., D) and permutation matrix q of shape (D, D)."""
    D = q.shape[-1]
    lead_shape = x.shape[:-1]
    M = math.prod(lead_shape) if lead_shape else 1
    x2 = x.reshape(M, D)

    # 0/1 permutation entries are exact in bf16 -> halve Q's HBM read / VMEM footprint.
    q = q.astype(jnp.bfloat16)

    itemsize = jnp.dtype(x.dtype).itemsize
    tm = _choose_row_tile(M, tm)
    # Clamp tm so the (tm, D) x-tile stays <= ~4 MiB: double-buffered tiles then
    # fit comfortably in scoped VMEM on v5e / v6e / v7x even for large D.
    tm_cap = max(32, ((4 << 20) // max(D * itemsize, 1)) // 32 * 32)
    tm = min(tm, tm_cap)

    # Tile the output/N axis only when D is large and lane-aligned; otherwise the
    # whole (D, D) Q tile stays resident (tiny in the small-D case).
    tn_eff = tn if (D % 128 == 0 and D > tn) else D

    grid = (pl.cdiv(M, tm), pl.cdiv(D, tn_eff))

    # Scoped-VMEM limit sized to the actual double-buffered tiles (defaults are
    # only 16/32 MiB); capped at 64 MiB so it is always v7x-safe.
    need = 2 * (tm * D * itemsize + tm * tn_eff * itemsize + D * tn_eff * 2)
    vmem_limit = int(min(max(need * 3 // 2 + (1 << 20), 32 << 20), 64 << 20))

    out = pl.pallas_call(
        _permute_matmul_kernel,
        out_shape=jax.ShapeDtypeStruct((M, D), x.dtype),
        grid_spec=pltpu.PrefetchScalarGridSpec(
            num_scalar_prefetch=0,
            grid=grid,
            in_specs=[
                pl.BlockSpec((tm, D), lambda i, j: (i, 0)),
                pl.BlockSpec((D, tn_eff), lambda i, j: (0, j)),
            ],
            out_specs=pl.BlockSpec((tm, tn_eff), lambda i, j: (i, j)),
        ),
        compiler_params=pltpu.CompilerParams(
            dimension_semantics=("parallel", "parallel"),
            vmem_limit_bytes=vmem_limit,
        ),
    )(x2, q)

    return out.reshape(*lead_shape, D)


def random_permute_inverse(z, q, *, tm=512, tn=512):
    """Inverse pass of the module: Z @ Q^T."""
    return random_permute_forward(z, q.T, tm=tm, tn=tn)


def make_permutation_matrix(key, D, dtype=jnp.float32):
    """Mirrors: Q = zeros(D,D); Q[randperm(D), randperm(D)] = 1."""
    k_row, k_col = jax.random.split(key)
    rows = jax.random.permutation(k_row, D)
    cols = jax.random.permutation(k_col, D)
    q = jnp.zeros((D, D), dtype=dtype)
    q = q.at[rows, cols].set(1.0)
    return q


if __name__ == "__main__":
    key = jax.random.PRNGKey(0)
    k_q, k_x = jax.random.split(key)

    D = 32
    batch, seq = 2, 8  # X shape: (batch, seq, D)

    q = make_permutation_matrix(k_q, D, dtype=jnp.float32)
    x = jax.random.normal(k_x, (batch, seq, D), dtype=jnp.float32)

    out = random_permute_forward(x, q)
    out = jax.block_until_ready(out)

    # Reference check in plain JAX.
    ref = x @ q
    assert out.shape == ref.shape
    assert jnp.allclose(out, ref, atol=1e-5), "forward mismatch vs reference"

    # Inverse path sanity: Z @ Q^T should recover X (Q is a permutation matrix).
    inv = jax.block_until_ready(random_permute_inverse(out, q))
    assert jnp.allclose(inv, x, atol=1e-5), "inverse mismatch vs reference"

    print("KERNEL_OK")
</pallas_src>

<mosaic_0001>
module attributes {stable_mosaic.version = 11 : i64} {
  func.func @_permute_matmul_kernel(%arg0: i32, %arg1: i32, %arg2: memref<32x32xf32, #tpu.memory_space<vmem>>, %arg3: memref<32x32xbf16, #tpu.memory_space<vmem>>, %arg4: memref<32x32xf32, #tpu.memory_space<vmem>>) attributes {dimension_semantics = [#tpu.dimension_semantics<parallel>, #tpu.dimension_semantics<parallel>], iteration_bounds = array<i64: 1, 1>, scalar_prefetch = 0 : i64, scratch_operands = 0 : i64, tpu.core_type = #tpu.core_type<tc>, window_params = [{transform_indices = @transform_0, window_bounds = array<i64: 32, 32>}, {transform_indices = @transform_1, window_bounds = array<i64: 32, 32>}, {transform_indices = @transform_2, window_bounds = array<i64: 32, 32>}]} {
    %c0 = arith.constant 0 : index
    %c0_0 = arith.constant 0 : index
    %0 = vector.load %arg3[%c0, %c0_0] : memref<32x32xbf16, #tpu.memory_space<vmem>>, vector<32x32xbf16>
    %1 = arith.extf %0 : vector<32x32xbf16> to vector<32x32xf32>
    %c0_1 = arith.constant 0 : index
    %c0_2 = arith.constant 0 : index
    %2 = vector.load %arg2[%c0_1, %c0_2] : memref<32x32xf32, #tpu.memory_space<vmem>>, vector<32x32xf32>
    %cst = arith.constant dense<0.000000e+00> : vector<32x32xf32>
    %3 = tpu.matmul %2, %1, %cst {dimension_numbers = #tpu.dot_dimension_numbers<[1], [0], [0], [1], [0, 0, 1, 1], [], []>} : vector<32x32xf32>, vector<32x32xf32>, vector<32x32xf32> -> vector<32x32xf32>
    %c0_3 = arith.constant 0 : index
    %c0_4 = arith.constant 0 : index
    %4 = vector.load %arg4[%c0_3, %c0_4] : memref<32x32xf32, #tpu.memory_space<vmem>>, vector<32x32xf32>
    tpu.vector_store %arg4[%c0_3, %c0_4], %3 {strides = array<i32>} : memref<32x32xf32, #tpu.memory_space<vmem>>, vector<32x32xf32>,
    return
  }
  func.func @transform_0(%arg0: i32, %arg1: i32) -> (i32, i32) {
    %c0_i32 = arith.constant 0 : i32
    %c0_i32_0 = arith.constant 0 : i32
    return %arg0, %c0_i32 : i32, i32
  }
  func.func @transform_1(%arg0: i32, %arg1: i32) -> (i32, i32) {
    %c0_i32 = arith.constant 0 : i32
    %c0_i32_0 = arith.constant 0 : i32
    return %c0_i32, %arg1 : i32, i32
  }
  func.func @transform_2(%arg0: i32, %arg1: i32) -> (i32, i32) {
    %c0_i32 = arith.constant 0 : i32
    return %arg0, %arg1 : i32, i32
  }
}

</mosaic_0001>

<bundles_post_ra>
// kernel: random_permute_forward.1
= control target key start
LH: loop header
LB: loop body
LE: loop exit
PB: predicated region body
PF: predicated region fallthrough
CT: control target
= control target key end

     0   :  { %7 = vsyncpa [#allocation3], 0  ;;  %vm24_vm0 = vcmask 261120   ;;  %s272_s0 = inlined_call_operand.vmem [shape: f32[16,32], index: 0, kind: input, shape index: {}]   ;;  %s273_s1 = inlined_call_operand.vmem [shape: bf16[32,32], index: 1, kind: input, shape index: {}]   ;;  %s274_s2 = inlined_call_operand.hbm [shape: f32[16,32], index: 2, kind: output, shape index: {}]  }
   0x1   :  { %v147_v0 = vld [vmem:[%s273_s1] sm:$0xff]   ;;  %v154_v1 = vld [vmem:[%s273_s1 + $0x8] sm:$0xff]   ;;  %v22_v3 = vld [vmem:[%s272_s0 + $0x10] sm:$0xff] }
   0x2   :  { %178 = vmatprep.subr.bf16.mxu0 %v147_v0  ;;  %185 = vmatprep.subr.bf16.mxu1 %v147_v0  ;;  %v20_v2 = vld [vmem:[%s272_s0] sm:$0xff]  ;;  %v21_v4 = vld [vmem:[%s272_s0 + $0x8] sm:$0xff]  ;;  %v23_v5 = vld [vmem:[%s272_s0 + $0x18] sm:$0xff] }
   0x3   :  { %180 = vmatpush3.bf16.msra.mxu0 %v147_v0  ;;  %187 = vmatpush3.bf16.msra.mxu1 %v147_v0 }
   0x4   :  { %182 = vmatprep.subr.bf16.mxu0 %v154_v1  ;;  %186 = vmatprep.subr.bf16.mxu1 %v154_v1 }
   0x5   :  { %171 = vmatprep.mubr.msk.f32.mxu0 %vm24_vm0, %v20_v2  ;;  %174 = vmatprep.mubr.msk.f32.mxu1 %vm24_vm0, %v22_v3 }
   0x7   :  { %184 = vmatpush3.bf16.msra.mxu0 %v154_v1  ;;  %188 = vmatpush3.bf16.msra.mxu1 %v154_v1 }
   0xa   :  { %172 = vmatmul.mubr.msk.f32.vlgmr.msra.gmra.mrb[0].mxu0 %vm24_vm0, %v21_v4  ;;  %175 = vmatmul.mubr.msk.f32.vlgmr.msra.gmra.mrb[0].mxu1 %vm24_vm0, %v23_v5 }
  0xdd   :  { %v173_v6 = vpop.f32.mrb[0].mxu0  ;;  %v176_v7 = vpop.f32.mrb[0].mxu1 }
  0xde   :  { %123 = vst.msk [vmem:[#allocation2 + $0x8] sm:$0xff] %vm24_vm0, %v173_v6  ;;  %125 = vst.msk [vmem:[#allocation2 + $0x18] sm:$0xff] %vm24_vm0, %v176_v7  ;;  %v103_v8 = vpop.f32.mrb[1].mxu0  ;;  %v113_v9 = vpop.f32.mrb[1].mxu1 }
  0xdf   :  { %122 = vst.msk [vmem:[#allocation2] sm:$0xff] %vm24_vm0, %v103_v8  ;;  %124 = vst.msk [vmem:[#allocation2 + $0x10] sm:$0xff] %vm24_vm0, %v113_v9 }
  0xe0   :  { %130 = vsyncadd [#allocation3], 256  ;;  %s216_s20 = smov [#allocation2]  }
  0xe1   :  { %s131_s21 = sshll.u32 %s216_s20, 4  ;;  %s132_s21 = int_to_ptr.vmem [resolvable:$true] %s131_s21 }
  0xe2   :  { %s192_s0 = scalar_lea.vmem %s132_s21, 256  ;;  %s196_s22 = scalar_lea.vmem %s132_s21, 512 }
  0xe3   :  { %p193_p0 = scmp.ne.s32.totalorder %s132_s21, %s192_s0  ;;  %p197_p1 = scmp.lt.s32.totalorder %s132_s21, %s132_s21 }
  0xe4   :  { %p198_p2 = scmp.lt.s32.totalorder %s196_s22, %s192_s0 }
  0xe6   :  { %p199_p3 = por %p198_p2, %p197_p1 }
  0xe8   :  { %p200_p4 = pnand %p199_p3, %p193_p0 }
  0xea   :  { %203 = shalt.err (!%p200_p4)
}
  0xeb   :  { %s204_s25 = scalar_lea.hbm %s274_s2, 256 }
  0xec   :  { %p205_p5 = scmp.ne.s32.totalorder %s274_s2, %s204_s25  ;;  %p208_p6 = scmp.lt.u32.totalorder %s204_s25, %s274_s2 }
  0xee   :  { %p210_p7 = pnand %p208_p6, %p205_p5 }
  0xf0   :  { %213 = shalt.err (!%p210_p7)
}
  0xf1   :  { %s217_s30 = smov 128   ;;  %s218_s3 = smov 8  }
  0xf2   :  { %137 = dma.vmem_to_hbm [thread:$0]  %s132_s21, 256, %s274_s2, [#allocation3], %s217_s30, %s217_s30, %s218_s3  }
  0xf3   :  { %214 = dma.done.wait [#allocation3], 512  }
  0xf4   :  { %215 = vsyncadd [#allocation3], 4294966784 }
  0xf5   :  { %141 = vsyncpa [#allocation3], 1 }

</bundles_post_ra>
